<compile_context>
chip_gen: v6e
topology: v6e:2x2x1
jax: 0.10.0
libtpu: 0.0.40
codegen_flags: <defaults>
</compile_context>

<pallas_src>
import functools

import jax
import jax.numpy as jnp
import numpy as np
from jax import lax
from jax.experimental import pallas as pl
from jax.experimental.pallas import tpu as pltpu

# Packing layout of the flat parameter vector (all f32 scalars, lives in SMEM):
#   w1: [ 0:10)  (2,5) row-major -> W1[k, j] = theta[k*5 + j]
#   b1: [10:15)
#   w2: [15:40)  (5,5) row-major -> W2[k, j] = theta[15 + k*5 + j]
#   b2: [40:45)
#   w3: [45:50)  (5,1)           -> W3[k, 0] = theta[45 + k]
#   b3: [50]
N_THETA = 51


def moon_mlp_kernel(theta_ref, x0_ref, x1_ref, o_ref):
    """theta_ref: (51,) f32 SMEM; x0/x1/o refs: (TR, TC) f32 VMEM tiles."""
    tr = o_ref.shape[0]
    n_chunks = tr // 8  # TR is a multiple of 8 by construction

    # Hoist all 51 parameter scalars out of the chunk loop (SMEM -> scalars once).
    w1 = [[theta_ref[k * 5 + j] for j in range(5)] for k in range(2)]
    b1 = [theta_ref[10 + j] for j in range(5)]
    w2 = [[theta_ref[15 + k * 5 + j] for j in range(5)] for k in range(5)]
    b2 = [theta_ref[40 + j] for j in range(5)]
    w3 = [theta_ref[45 + k] for k in range(5)]
    b3 = theta_ref[50]

    def chunk(c, carry):
        r = pl.multiple_of(c * 8, 8)
        # (8, TC) register-resident chunks: full sublane + lane occupancy.
        x = [x0_ref[pl.ds(r, 8), :], x1_ref[pl.ds(r, 8), :]]

        # layer1 + ReLU (2 -> 5): scalar-splat * batch tile, pure VPU.
        h1 = []
        for j in range(5):
            acc = b1[j]
            for k in range(2):
                acc = acc + w1[k][j] * x[k]
            h1.append(jnp.maximum(acc, 0.0))

        # layer2 + ReLU (5 -> 5)
        h2 = []
        for j in range(5):
            acc = b2[j]
            for k in range(5):
                acc = acc + w2[k][j] * h1[k]
            h2.append(jnp.maximum(acc, 0.0))

        # layer3 (5 -> 1), no activation (matches the PyTorch forward)
        acc = b3
        for k in range(5):
            acc = acc + w3[k] * h2[k]

        o_ref[pl.ds(r, 8), :] = acc
        return carry

    lax.fori_loop(0, n_chunks, chunk, 0)


def pack_params(params):
    """Flatten all weights/biases into one f32 vector (SMEM payload)."""
    theta = jnp.concatenate([
        params["w1"].reshape(-1),   # (2,5) row-major
        params["b1"].reshape(-1),   # (5,)
        params["w2"].reshape(-1),   # (5,5) row-major
        params["b2"].reshape(-1),   # (5,)
        params["w3"].reshape(-1),   # (5,1)
        params["b3"].reshape(-1),   # (1,)
    ]).astype(jnp.float32)
    assert theta.shape == (N_THETA,)
    return theta


def _round_up(x, m):
    return ((x + m - 1) // m) * m


@functools.partial(jax.jit, static_argnames=("max_tile_elems",))
def moon_model_v0_forward(x, params, *, max_tile_elems=131072):
    """x: (B, 2) float32 -> (B, 1) float32, identical math to the PyTorch module."""
    B = x.shape[0]
    theta = pack_params(params)

    # --- Static tiling decisions (shapes are static under jit). ---------------
    bp0 = _round_up(B, 1024)                        # minimum: one full (8,128) tile
    n_blk = max(1, -(-bp0 // max_tile_elems))       # grid steps
    te = _round_up(-(-bp0 // n_blk), 1024)          # elements per grid step
    bp = n_blk * te                                 # padded batch
    # Shape each block as (TR, TC): TC in {512,256,128} so an (8,TC) chunk stays
    # register-resident; TR (multiple of 8) soaks up the rest of the block.
    tc = next(c for c in (512, 256, 128) if te % c == 0 and (te // c) % 8 == 0)
    tr = te // tc

    # --- Lane/sublane-dense batch layout: one 2-D plane per input feature. ----
    xt = jnp.zeros((2, bp), jnp.float32).at[:, :B].set(x.T.astype(jnp.float32))
    x0t = xt[0].reshape(n_blk * tr, tc)             # contiguous reshape (free)
    x1t = xt[1].reshape(n_blk * tr, tc)

    flops = 90 * bp  # ~ (20+5) + (50+5) + 10 VPU ops per batch element
    bytes_accessed = 2 * bp * 4 + bp * 4 + N_THETA * 4

    out2d = pl.pallas_call(
        moon_mlp_kernel,
        out_shape=jax.ShapeDtypeStruct((n_blk * tr, tc), jnp.float32),
        grid_spec=pltpu.PrefetchScalarGridSpec(
            num_scalar_prefetch=1,                  # theta -> SMEM, resident for all steps
            grid=(n_blk,),
            in_specs=[pl.BlockSpec((tr, tc), lambda i, theta: (i, 0)),
                      pl.BlockSpec((tr, tc), lambda i, theta: (i, 0))],
            out_specs=pl.BlockSpec((tr, tc), lambda i, theta: (i, 0)),
        ),
        compiler_params=pltpu.CompilerParams(
            dimension_semantics=("parallel",),       # shard batch across TCs on v7x
            vmem_limit_bytes=32 * 1024 * 1024,
        ),
        cost_estimate=pl.CostEstimate(
            flops=flops, transcendentals=0, bytes_accessed=bytes_accessed),
    )(theta, x0t, x1t)

    # Back to the public (B, 1) contract (contiguous reshapes + slice).
    return out2d.reshape(bp)[:B].reshape(B, 1)


def init_params(key):
    """Deterministic init mimicking nn.Linear's U(-1/sqrt(fan_in), 1/sqrt(fan_in)).

    Weights are stored as (in_features, out_features) — the transpose of
    PyTorch's (out, in) layout — so y = x @ W + b matches x @ W.T + b in torch.
    """
    dims = [(2, 5), (5, 5), (5, 1)]
    params = {}
    for i, (fan_in, fan_out) in enumerate(dims, start=1):
        key, kw, kb = jax.random.split(key, 3)
        bound = 1.0 / np.sqrt(fan_in)
        params[f"w{i}"] = jax.random.uniform(
            kw, (fan_in, fan_out), jnp.float32, minval=-bound, maxval=bound)
        params[f"b{i}"] = jax.random.uniform(
            kb, (1, fan_out), jnp.float32, minval=-bound, maxval=bound)
    return params


def reference_forward(x, params):
    h1 = jnp.maximum(x @ params["w1"] + params["b1"], 0.0)
    h2 = jnp.maximum(h1 @ params["w2"] + params["b2"], 0.0)
    return h2 @ params["w3"] + params["b3"]


if __name__ == "__main__":
    key = jax.random.PRNGKey(0)
    key, kx1, kx2 = jax.random.split(key, 3)
    params = init_params(key)

    # Case 1: padding path (1000 -> 1024), single grid step, single chunk.
    B1 = 1000
    x1 = jax.random.normal(kx1, (B1, 2), dtype=jnp.float32)
    out1 = jax.block_until_ready(moon_model_v0_forward(x1, params))
    ref1 = reference_forward(x1, params)
    np.testing.assert_allclose(np.asarray(out1), np.asarray(ref1), rtol=1e-5, atol=1e-5)
    assert out1.shape == (B1, 1) and out1.dtype == jnp.float32

    # Case 2: exercises a multi-step grid + in-kernel chunk loop (tiny tiles forced).
    B2 = 5000
    x2 = jax.random.normal(kx2, (B2, 2), dtype=jnp.float32)
    out2 = jax.block_until_ready(moon_model_v0_forward(x2, params, max_tile_elems=1024))
    ref2 = reference_forward(x2, params)
    np.testing.assert_allclose(np.asarray(out2), np.asarray(ref2), rtol=1e-5, atol=1e-5)
    assert out2.shape == (B2, 1) and out2.dtype == jnp.float32

    print("KERNEL_OK")
</pallas_src>

<mosaic_0001>
module attributes {stable_mosaic.version = 11 : i64} {
  func.func @moon_mlp_kernel(%arg0: i32, %arg1: memref<51xf32, #tpu.memory_space<smem>>, %arg2: memref<8x128xf32, #tpu.memory_space<vmem>>, %arg3: memref<8x128xf32, #tpu.memory_space<vmem>>, %arg4: memref<8x128xf32, #tpu.memory_space<vmem>>) attributes {dimension_semantics = [#tpu.dimension_semantics<parallel>], iteration_bounds = array<i64: 1>, scalar_prefetch = 1 : i64, scratch_operands = 0 : i64, tpu.core_type = #tpu.core_type<tc>, window_params = [{transform_indices = @transform_0, window_bounds = array<i64: 8, 128>}, {transform_indices = @transform_1, window_bounds = array<i64: 8, 128>}, {transform_indices = @transform_2, window_bounds = array<i64: 8, 128>}]} {
    %c0 = arith.constant 0 : index
    %0 = memref.load %arg1[%c0] : memref<51xf32, #tpu.memory_space<smem>>
    %c1 = arith.constant 1 : index
    %1 = memref.load %arg1[%c1] : memref<51xf32, #tpu.memory_space<smem>>
    %c2 = arith.constant 2 : index
    %2 = memref.load %arg1[%c2] : memref<51xf32, #tpu.memory_space<smem>>
    %c3 = arith.constant 3 : index
    %3 = memref.load %arg1[%c3] : memref<51xf32, #tpu.memory_space<smem>>
    %c4 = arith.constant 4 : index
    %4 = memref.load %arg1[%c4] : memref<51xf32, #tpu.memory_space<smem>>
    %c5 = arith.constant 5 : index
    %5 = memref.load %arg1[%c5] : memref<51xf32, #tpu.memory_space<smem>>
    %c6 = arith.constant 6 : index
    %6 = memref.load %arg1[%c6] : memref<51xf32, #tpu.memory_space<smem>>
    %c7 = arith.constant 7 : index
    %7 = memref.load %arg1[%c7] : memref<51xf32, #tpu.memory_space<smem>>
    %c8 = arith.constant 8 : index
    %8 = memref.load %arg1[%c8] : memref<51xf32, #tpu.memory_space<smem>>
    %c9 = arith.constant 9 : index
    %9 = memref.load %arg1[%c9] : memref<51xf32, #tpu.memory_space<smem>>
    %c10 = arith.constant 10 : index
    %10 = memref.load %arg1[%c10] : memref<51xf32, #tpu.memory_space<smem>>
    %c11 = arith.constant 11 : index
    %11 = memref.load %arg1[%c11] : memref<51xf32, #tpu.memory_space<smem>>
    %c12 = arith.constant 12 : index
    %12 = memref.load %arg1[%c12] : memref<51xf32, #tpu.memory_space<smem>>
    %c13 = arith.constant 13 : index
    %13 = memref.load %arg1[%c13] : memref<51xf32, #tpu.memory_space<smem>>
    %c14 = arith.constant 14 : index
    %14 = memref.load %arg1[%c14] : memref<51xf32, #tpu.memory_space<smem>>
    %c15 = arith.constant 15 : index
    %15 = memref.load %arg1[%c15] : memref<51xf32, #tpu.memory_space<smem>>
    %c16 = arith.constant 16 : index
    %16 = memref.load %arg1[%c16] : memref<51xf32, #tpu.memory_space<smem>>
    %c17 = arith.constant 17 : index
    %17 = memref.load %arg1[%c17] : memref<51xf32, #tpu.memory_space<smem>>
    %c18 = arith.constant 18 : index
    %18 = memref.load %arg1[%c18] : memref<51xf32, #tpu.memory_space<smem>>
    %c19 = arith.constant 19 : index
    %19 = memref.load %arg1[%c19] : memref<51xf32, #tpu.memory_space<smem>>
    %c20 = arith.constant 20 : index
    %20 = memref.load %arg1[%c20] : memref<51xf32, #tpu.memory_space<smem>>
    %c21 = arith.constant 21 : index
    %21 = memref.load %arg1[%c21] : memref<51xf32, #tpu.memory_space<smem>>
    %c22 = arith.constant 22 : index
    %22 = memref.load %arg1[%c22] : memref<51xf32, #tpu.memory_space<smem>>
    %c23 = arith.constant 23 : index
    %23 = memref.load %arg1[%c23] : memref<51xf32, #tpu.memory_space<smem>>
    %c24 = arith.constant 24 : index
    %24 = memref.load %arg1[%c24] : memref<51xf32, #tpu.memory_space<smem>>
    %c25 = arith.constant 25 : index
    %25 = memref.load %arg1[%c25] : memref<51xf32, #tpu.memory_space<smem>>
    %c26 = arith.constant 26 : index
    %26 = memref.load %arg1[%c26] : memref<51xf32, #tpu.memory_space<smem>>
    %c27 = arith.constant 27 : index
    %27 = memref.load %arg1[%c27] : memref<51xf32, #tpu.memory_space<smem>>
    %c28 = arith.constant 28 : index
    %28 = memref.load %arg1[%c28] : memref<51xf32, #tpu.memory_space<smem>>
    %c29 = arith.constant 29 : index
    %29 = memref.load %arg1[%c29] : memref<51xf32, #tpu.memory_space<smem>>
    %c30 = arith.constant 30 : index
    %30 = memref.load %arg1[%c30] : memref<51xf32, #tpu.memory_space<smem>>
    %c31 = arith.constant 31 : index
    %31 = memref.load %arg1[%c31] : memref<51xf32, #tpu.memory_space<smem>>
    %c32 = arith.constant 32 : index
    %32 = memref.load %arg1[%c32] : memref<51xf32, #tpu.memory_space<smem>>
    %c33 = arith.constant 33 : index
    %33 = memref.load %arg1[%c33] : memref<51xf32, #tpu.memory_space<smem>>
    %c34 = arith.constant 34 : index
    %34 = memref.load %arg1[%c34] : memref<51xf32, #tpu.memory_space<smem>>
    %c35 = arith.constant 35 : index
    %35 = memref.load %arg1[%c35] : memref<51xf32, #tpu.memory_space<smem>>
    %c36 = arith.constant 36 : index
    %36 = memref.load %arg1[%c36] : memref<51xf32, #tpu.memory_space<smem>>
    %c37 = arith.constant 37 : index
    %37 = memref.load %arg1[%c37] : memref<51xf32, #tpu.memory_space<smem>>
    %c38 = arith.constant 38 : index
    %38 = memref.load %arg1[%c38] : memref<51xf32, #tpu.memory_space<smem>>
    %c39 = arith.constant 39 : index
    %39 = memref.load %arg1[%c39] : memref<51xf32, #tpu.memory_space<smem>>
    %c40 = arith.constant 40 : index
    %40 = memref.load %arg1[%c40] : memref<51xf32, #tpu.memory_space<smem>>
    %c41 = arith.constant 41 : index
    %41 = memref.load %arg1[%c41] : memref<51xf32, #tpu.memory_space<smem>>
    %c42 = arith.constant 42 : index
    %42 = memref.load %arg1[%c42] : memref<51xf32, #tpu.memory_space<smem>>
    %c43 = arith.constant 43 : index
    %43 = memref.load %arg1[%c43] : memref<51xf32, #tpu.memory_space<smem>>
    %c44 = arith.constant 44 : index
    %44 = memref.load %arg1[%c44] : memref<51xf32, #tpu.memory_space<smem>>
    %c45 = arith.constant 45 : index
    %45 = memref.load %arg1[%c45] : memref<51xf32, #tpu.memory_space<smem>>
    %c46 = arith.constant 46 : index
    %46 = memref.load %arg1[%c46] : memref<51xf32, #tpu.memory_space<smem>>
    %c47 = arith.constant 47 : index
    %47 = memref.load %arg1[%c47] : memref<51xf32, #tpu.memory_space<smem>>
    %c48 = arith.constant 48 : index
    %48 = memref.load %arg1[%c48] : memref<51xf32, #tpu.memory_space<smem>>
    %c49 = arith.constant 49 : index
    %49 = memref.load %arg1[%c49] : memref<51xf32, #tpu.memory_space<smem>>
    %c50 = arith.constant 50 : index
    %50 = memref.load %arg1[%c50] : memref<51xf32, #tpu.memory_space<smem>>
    %c0_i32 = arith.constant 0 : i32
    %c8_i32 = arith.constant 8 : i32
    %51 = arith.muli %c0_i32, %c8_i32 : i32
    %52 = tpu.assume_multiple %51, 8 : i32
    %53 = arith.index_cast %52 : i32 to index
    %c0_0 = arith.constant 0 : index
    %54 = vector.load %arg2[%53, %c0_0] : memref<8x128xf32, #tpu.memory_space<vmem>>, vector<8x128xf32>
    %55 = arith.index_cast %52 : i32 to index
    %c0_1 = arith.constant 0 : index
    %56 = vector.load %arg3[%55, %c0_1] : memref<8x128xf32, #tpu.memory_space<vmem>>, vector<8x128xf32>
    %57 = vector.broadcast %0 : f32 to vector<8x128xf32>
    %58 = arith.mulf %57, %54 : vector<8x128xf32>
    %59 = vector.broadcast %10 : f32 to vector<8x128xf32>
    %60 = arith.addf %59, %58 : vector<8x128xf32>
    %61 = vector.broadcast %5 : f32 to vector<8x128xf32>
    %62 = arith.mulf %61, %56 : vector<8x128xf32>
    %63 = arith.addf %60, %62 : vector<8x128xf32>
    %cst = arith.constant 0.000000e+00 : f32
    %64 = vector.broadcast %cst : f32 to vector<8x128xf32>
    %65 = arith.maximumf %63, %64 : vector<8x128xf32>
    %66 = vector.broadcast %1 : f32 to vector<8x128xf32>
    %67 = arith.mulf %66, %54 : vector<8x128xf32>
    %68 = vector.broadcast %11 : f32 to vector<8x128xf32>
    %69 = arith.addf %68, %67 : vector<8x128xf32>
    %70 = vector.broadcast %6 : f32 to vector<8x128xf32>
    %71 = arith.mulf %70, %56 : vector<8x128xf32>
    %72 = arith.addf %69, %71 : vector<8x128xf32>
    %cst_2 = arith.constant 0.000000e+00 : f32
    %73 = vector.broadcast %cst_2 : f32 to vector<8x128xf32>
    %74 = arith.maximumf %72, %73 : vector<8x128xf32>
    %75 = vector.broadcast %2 : f32 to vector<8x128xf32>
    %76 = arith.mulf %75, %54 : vector<8x128xf32>
    %77 = vector.broadcast %12 : f32 to vector<8x128xf32>
    %78 = arith.addf %77, %76 : vector<8x128xf32>
    %79 = vector.broadcast %7 : f32 to vector<8x128xf32>
    %80 = arith.mulf %79, %56 : vector<8x128xf32>
    %81 = arith.addf %78, %80 : vector<8x128xf32>
    %cst_3 = arith.constant 0.000000e+00 : f32
    %82 = vector.broadcast %cst_3 : f32 to vector<8x128xf32>
    %83 = arith.maximumf %81, %82 : vector<8x128xf32>
    %84 = vector.broadcast %3 : f32 to vector<8x128xf32>
    %85 = arith.mulf %84, %54 : vector<8x128xf32>
    %86 = vector.broadcast %13 : f32 to vector<8x128xf32>
    %87 = arith.addf %86, %85 : vector<8x128xf32>
    %88 = vector.broadcast %8 : f32 to vector<8x128xf32>
    %89 = arith.mulf %88, %56 : vector<8x128xf32>
    %90 = arith.addf %87, %89 : vector<8x128xf32>
    %cst_4 = arith.constant 0.000000e+00 : f32
    %91 = vector.broadcast %cst_4 : f32 to vector<8x128xf32>
    %92 = arith.maximumf %90, %91 : vector<8x128xf32>
    %93 = vector.broadcast %4 : f32 to vector<8x128xf32>
    %94 = arith.mulf %93, %54 : vector<8x128xf32>
    %95 = vector.broadcast %14 : f32 to vector<8x128xf32>
    %96 = arith.addf %95, %94 : vector<8x128xf32>
    %97 = vector.broadcast %9 : f32 to vector<8x128xf32>
    %98 = arith.mulf %97, %56 : vector<8x128xf32>
    %99 = arith.addf %96, %98 : vector<8x128xf32>
    %cst_5 = arith.constant 0.000000e+00 : f32
    %100 = vector.broadcast %cst_5 : f32 to vector<8x128xf32>
    %101 = arith.maximumf %99, %100 : vector<8x128xf32>
    %102 = vector.broadcast %15 : f32 to vector<8x128xf32>
    %103 = arith.mulf %102, %65 : vector<8x128xf32>
    %104 = vector.broadcast %40 : f32 to vector<8x128xf32>
    %105 = arith.addf %104, %103 : vector<8x128xf32>
    %106 = vector.broadcast %20 : f32 to vector<8x128xf32>
    %107 = arith.mulf %106, %74 : vector<8x128xf32>
    %108 = arith.addf %105, %107 : vector<8x128xf32>
    %109 = vector.broadcast %25 : f32 to vector<8x128xf32>
    %110 = arith.mulf %109, %83 : vector<8x128xf32>
    %111 = arith.addf %108, %110 : vector<8x128xf32>
    %112 = vector.broadcast %30 : f32 to vector<8x128xf32>
    %113 = arith.mulf %112, %92 : vector<8x128xf32>
    %114 = arith.addf %111, %113 : vector<8x128xf32>
    %115 = vector.broadcast %35 : f32 to vector<8x128xf32>
    %116 = arith.mulf %115, %101 : vector<8x128xf32>
    %117 = arith.addf %114, %116 : vector<8x128xf32>
    %cst_6 = arith.constant 0.000000e+00 : f32
    %118 = vector.broadcast %cst_6 : f32 to vector<8x128xf32>
    %119 = arith.maximumf %117, %118 : vector<8x128xf32>
    %120 = vector.broadcast %16 : f32 to vector<8x128xf32>
    %121 = arith.mulf %120, %65 : vector<8x128xf32>
    %122 = vector.broadcast %41 : f32 to vector<8x128xf32>
    %123 = arith.addf %122, %121 : vector<8x128xf32>
    %124 = vector.broadcast %21 : f32 to vector<8x128xf32>
    %125 = arith.mulf %124, %74 : vector<8x128xf32>
    %126 = arith.addf %123, %125 : vector<8x128xf32>
    %127 = vector.broadcast %26 : f32 to vector<8x128xf32>
    %128 = arith.mulf %127, %83 : vector<8x128xf32>
    %129 = arith.addf %126, %128 : vector<8x128xf32>
    %130 = vector.broadcast %31 : f32 to vector<8x128xf32>
    %131 = arith.mulf %130, %92 : vector<8x128xf32>
    %132 = arith.addf %129, %131 : vector<8x128xf32>
    %133 = vector.broadcast %36 : f32 to vector<8x128xf32>
    %134 = arith.mulf %133, %101 : vector<8x128xf32>
    %135 = arith.addf %132, %134 : vector<8x128xf32>
    %cst_7 = arith.constant 0.000000e+00 : f32
    %136 = vector.broadcast %cst_7 : f32 to vector<8x128xf32>
    %137 = arith.maximumf %135, %136 : vector<8x128xf32>
    %138 = vector.broadcast %17 : f32 to vector<8x128xf32>
    %139 = arith.mulf %138, %65 : vector<8x128xf32>
    %140 = vector.broadcast %42 : f32 to vector<8x128xf32>
    %141 = arith.addf %140, %139 : vector<8x128xf32>
    %142 = vector.broadcast %22 : f32 to vector<8x128xf32>
    %143 = arith.mulf %142, %74 : vector<8x128xf32>
    %144 = arith.addf %141, %143 : vector<8x128xf32>
    %145 = vector.broadcast %27 : f32 to vector<8x128xf32>
    %146 = arith.mulf %145, %83 : vector<8x128xf32>
    %147 = arith.addf %144, %146 : vector<8x128xf32>
    %148 = vector.broadcast %32 : f32 to vector<8x128xf32>
    %149 = arith.mulf %148, %92 : vector<8x128xf32>
    %150 = arith.addf %147, %149 : vector<8x128xf32>
    %151 = vector.broadcast %37 : f32 to vector<8x128xf32>
    %152 = arith.mulf %151, %101 : vector<8x128xf32>
    %153 = arith.addf %150, %152 : vector<8x128xf32>
    %cst_8 = arith.constant 0.000000e+00 : f32
    %154 = vector.broadcast %cst_8 : f32 to vector<8x128xf32>
    %155 = arith.maximumf %153, %154 : vector<8x128xf32>
    %156 = vector.broadcast %18 : f32 to vector<8x128xf32>
    %157 = arith.mulf %156, %65 : vector<8x128xf32>
    %158 = vector.broadcast %43 : f32 to vector<8x128xf32>
    %159 = arith.addf %158, %157 : vector<8x128xf32>
    %160 = vector.broadcast %23 : f32 to vector<8x128xf32>
    %161 = arith.mulf %160, %74 : vector<8x128xf32>
    %162 = arith.addf %159, %161 : vector<8x128xf32>
    %163 = vector.broadcast %28 : f32 to vector<8x128xf32>
    %164 = arith.mulf %163, %83 : vector<8x128xf32>
    %165 = arith.addf %162, %164 : vector<8x128xf32>
    %166 = vector.broadcast %33 : f32 to vector<8x128xf32>
    %167 = arith.mulf %166, %92 : vector<8x128xf32>
    %168 = arith.addf %165, %167 : vector<8x128xf32>
    %169 = vector.broadcast %38 : f32 to vector<8x128xf32>
    %170 = arith.mulf %169, %101 : vector<8x128xf32>
    %171 = arith.addf %168, %170 : vector<8x128xf32>
    %cst_9 = arith.constant 0.000000e+00 : f32
    %172 = vector.broadcast %cst_9 : f32 to vector<8x128xf32>
    %173 = arith.maximumf %171, %172 : vector<8x128xf32>
    %174 = vector.broadcast %19 : f32 to vector<8x128xf32>
    %175 = arith.mulf %174, %65 : vector<8x128xf32>
    %176 = vector.broadcast %44 : f32 to vector<8x128xf32>
    %177 = arith.addf %176, %175 : vector<8x128xf32>
    %178 = vector.broadcast %24 : f32 to vector<8x128xf32>
    %179 = arith.mulf %178, %74 : vector<8x128xf32>
    %180 = arith.addf %177, %179 : vector<8x128xf32>
    %181 = vector.broadcast %29 : f32 to vector<8x128xf32>
    %182 = arith.mulf %181, %83 : vector<8x128xf32>
    %183 = arith.addf %180, %182 : vector<8x128xf32>
    %184 = vector.broadcast %34 : f32 to vector<8x128xf32>
    %185 = arith.mulf %184, %92 : vector<8x128xf32>
    %186 = arith.addf %183, %185 : vector<8x128xf32>
    %187 = vector.broadcast %39 : f32 to vector<8x128xf32>
    %188 = arith.mulf %187, %101 : vector<8x128xf32>
    %189 = arith.addf %186, %188 : vector<8x128xf32>
    %cst_10 = arith.constant 0.000000e+00 : f32
    %190 = vector.broadcast %cst_10 : f32 to vector<8x128xf32>
    %191 = arith.maximumf %189, %190 : vector<8x128xf32>
    %192 = vector.broadcast %45 : f32 to vector<8x128xf32>
    %193 = arith.mulf %192, %119 : vector<8x128xf32>
    %194 = vector.broadcast %50 : f32 to vector<8x128xf32>
    %195 = arith.addf %194, %193 : vector<8x128xf32>
    %196 = vector.broadcast %46 : f32 to vector<8x128xf32>
    %197 = arith.mulf %196, %137 : vector<8x128xf32>
    %198 = arith.addf %195, %197 : vector<8x128xf32>
    %199 = vector.broadcast %47 : f32 to vector<8x128xf32>
    %200 = arith.mulf %199, %155 : vector<8x128xf32>
    %201 = arith.addf %198, %200 : vector<8x128xf32>
    %202 = vector.broadcast %48 : f32 to vector<8x128xf32>
    %203 = arith.mulf %202, %173 : vector<8x128xf32>
    %204 = arith.addf %201, %203 : vector<8x128xf32>
    %205 = vector.broadcast %49 : f32 to vector<8x128xf32>
    %206 = arith.mulf %205, %191 : vector<8x128xf32>
    %207 = arith.addf %204, %206 : vector<8x128xf32>
    %208 = arith.index_cast %52 : i32 to index
    %c0_11 = arith.constant 0 : index
    %209 = vector.load %arg4[%208, %c0_11] : memref<8x128xf32, #tpu.memory_space<vmem>>, vector<8x128xf32>
    tpu.vector_store %arg4[%208, %c0_11], %207 {strides = array<i32>} : memref<8x128xf32, #tpu.memory_space<vmem>>, vector<8x128xf32>,
    %c1_i32 = arith.constant 1 : i32
    return
  }
  func.func @transform_0(%arg0: i32, %arg1: memref<51xf32, #tpu.memory_space<smem>>) -> (i32, i32) {
    %c0_i32 = arith.constant 0 : i32
    %c0_i32_0 = arith.constant 0 : i32
    return %arg0, %c0_i32 : i32, i32
  }
  func.func @transform_1(%arg0: i32, %arg1: memref<51xf32, #tpu.memory_space<smem>>) -> (i32, i32) {
    %c0_i32 = arith.constant 0 : i32
    %c0_i32_0 = arith.constant 0 : i32
    return %arg0, %c0_i32 : i32, i32
  }
  func.func @transform_2(%arg0: i32, %arg1: memref<51xf32, #tpu.memory_space<smem>>) -> (i32, i32) {
    %c0_i32 = arith.constant 0 : i32
    %c0_i32_0 = arith.constant 0 : i32
    return %arg0, %c0_i32 : i32, i32
  }
}

</mosaic_0001>

<bundles_post_ra>
// kernel: moon_model_v0_forward.1
= control target key start
LH: loop header
LB: loop body
LE: loop exit
PB: predicated region body
PF: predicated region fallthrough
CT: control target
= control target key end

     0   :  { %s507_s0 = inlined_call_operand.vmem [shape: f32[51], index: 0, kind: input, shape index: {}]   ;;  %s508_s1 = inlined_call_operand.vmem [shape: f32[8,128], index: 1, kind: input, shape index: {}]   ;;  %s509_s2 = inlined_call_operand.vmem [shape: f32[8,128], index: 2, kind: input, shape index: {}]   ;;  %s510_s3 = inlined_call_operand.hbm [shape: f32[8,128], index: 3, kind: output, shape index: {}]  }
   0x1   :  { %s8_s14 = sshll.u32 %s507_s0, 4  ;;  %s9_s14 = int_to_ptr.vmem [resolvable:$true] %s8_s14 }
   0x2   :  { %s280_s15 = scalar_lea.vmem %s9_s14, 16  ;;  %p285_p1 = scmp.lt.s32.totalorder %s9_s14, %s9_s14 }
   0x3   :  { %p281_p0 = scmp.ne.s32.totalorder %s9_s14, %s280_s15  ;;  %p286_p2 = scmp.lt.s32.totalorder %s280_s15, %s280_s15 }
   0x5   :  { %p287_p3 = por %p286_p2, %p285_p1 }
   0x7   :  { %p288_p4 = pnand %p287_p3, %p281_p0 }
   0x9   :  { %291 = shalt.err (!%p288_p4)  }
   0xa   :  { %s316_s16 = smov [#allocation3]  }
   0xb   :  { %11 = dma.vmem_to_smem %s9_s14, 16, %s316_s16, [#allocation2] }
   0xc   :  { %312 = dma.done.wait [#allocation2], 16 }
   0xd   :  { %313 = vsyncadd [#allocation2], 4294967280 }
   0xe   :  { %13 = sfence }
   0xf   :  { %14 = vsyncpa [#allocation5], 0  ;;  %s19_s17 = sld [smem:[#allocation3]]  ;;  %v70_v0 = vld [vmem:[%s508_s1] sm:$0xff] }
  0x10   :  { %s341_s18 = sld [smem:[#allocation3 + $0x1]]  ;;  %v71_v5 = vld [vmem:[%s509_s2] sm:$0xff] }
  0x11   :  { %s343_s19 = sld [smem:[#allocation3 + $0x2]] }
  0x12   :  { %s345_s0 = sld [smem:[#allocation3 + $0x3]] }
  0x13   :  { %s347_s20 = sld [smem:[#allocation3 + $0x4]] }
  0x14   :  { %s349_s21 = sld [smem:[#allocation3 + $0x5]] }
  0x15   :  { %s351_s22 = sld [smem:[#allocation3 + $0x6]]  ;;  %v72_v1 = vstv %s19_s17 }
  0x16   :  { %s353_s23 = sld [smem:[#allocation3 + $0x7]]  ;;  %v80_v2 = vstv %s341_s18  ;;  %v73_v3 = vmul.f32 %v72_v1, %v70_v0 }
  0x17   :  { %s355_s24 = sld [smem:[#allocation3 + $0x8]]  ;;  %v88_v4 = vstv %s343_s19  ;;  %v81_v8 = vmul.f32 %v80_v2, %v70_v0 }
  0x18   :  { %s357_s25 = sld [smem:[#allocation3 + $0x9]]  ;;  %v96_v10 = vstv %s345_s0  ;;  %v89_v13 = vmul.f32 %v88_v4, %v70_v0 }
  0x19   :  { %s359_s26 = sld [smem:[#allocation3 + $0xa]]  ;;  %v104_v11 = vstv %s347_s20  ;;  %v97_v19 = vmul.f32 %v96_v10, %v70_v0 }
  0x1a   :  { %s361_s27 = sld [smem:[#allocation3 + $0xb]]  ;;  %v76_v7 = vstv %s349_s21  ;;  %v105_v21 = vmul.f32 %v104_v11, %v70_v0 }
  0x1b   :  { %s363_s28 = sld [smem:[#allocation3 + $0xc]]  ;;  %v84_v9 = vstv %s351_s22  ;;  %v77_v15 = vmul.f32 %v76_v7, %v71_v5 }
  0x1c   :  { %s365_s29 = sld [smem:[#allocation3 + $0xd]]  ;;  %v92_v17 = vstv %s353_s23  ;;  %v85_v18 = vmul.f32 %v84_v9, %v71_v5 }
  0x1d   :  { %s367_s30 = sld [smem:[#allocation3 + $0xe]]  ;;  %v100_v20 = vstv %s355_s24  ;;  %v93_v27 = vmul.f32 %v92_v17, %v71_v5 }
  0x1e   :  { %s369_s4 = sld [smem:[#allocation3 + $0xf]]  ;;  %v108_v25 = vstv %s357_s25  ;;  %v101_v30 = vmul.f32 %v100_v20, %v71_v5 }
  0x1f   :  { %s371_s5 = sld [smem:[#allocation3 + $0x10]]  ;;  %v74_v6 = vstv %s359_s26  ;;  %v109_v32 = vmul.f32 %v108_v25, %v71_v5 }
  0x20   :  { %s373_s6 = sld [smem:[#allocation3 + $0x11]]  ;;  %v82_v12 = vstv %s361_s27  ;;  %v75_v14 = vadd.f32 %v74_v6, %v73_v3 }
  0x21   :  { %s375_s7 = sld [smem:[#allocation3 + $0x12]]  ;;  %v90_v16 = vstv %s363_s28  ;;  %v83_v22 = vadd.f32 %v82_v12, %v81_v8 }
  0x22   :  { %s377_s8 = sld [smem:[#allocation3 + $0x13]]  ;;  %v98_v23 = vstv %s365_s29  ;;  %v91_v26 = vadd.f32 %v90_v16, %v89_v13  ;;  %v78_v28 = vadd.f32 %v77_v15, %v75_v14 }
  0x23   :  { %s382_s11 = sld [smem:[#allocation3 + $0x14]]  ;;  %v106_v24 = vstv %s367_s30  ;;  %v99_v29 = vadd.f32 %v98_v23, %v97_v19  ;;  %v86_v33 = vadd.f32 %v85_v18, %v83_v22 }
  0x24   :  { %s384_s12 = sld [smem:[#allocation3 + $0x15]]  ;;  %v107_v31 = vadd.f32 %v106_v24, %v105_v21  ;;  %v94_v34 = vadd.f32 %v93_v27, %v91_v26  ;;  %v79_v35 = vmax.f32 %v78_v28, 0.0  ;;  %v112_v38 = vstv %s369_s4 }
  0x25   :  { %s387_s13 = sld [smem:[#allocation3 + $0x16]]  ;;  %v102_v36 = vadd.f32 %v101_v30, %v99_v29  ;;  %v129_v39 = vstv %s371_s5  ;;  %v87_v40 = vmax.f32 %v86_v33, 0.0 }
  0x26   :  { %s390_s14 = sld [smem:[#allocation3 + $0x17]]  ;;  %v110_v37 = vadd.f32 %v109_v32, %v107_v31  ;;  %v95_v41 = vmax.f32 %v94_v34, 0.0  ;;  %v146_v42 = vstv %s373_s6  ;;  %v113_v45 = vmul.f32 %v112_v38, %v79_v35 }
  0x27   :  { %s397_s1 = sld [smem:[#allocation3 + $0x18]]  ;;  %v163_v43 = vstv %s375_s7  ;;  %v130_v47 = vmul.f32 %v129_v39, %v79_v35  ;;  %v103_v49 = vmax.f32 %v102_v36, 0.0  ;;  %v147_v53 = vmul.f32 %v146_v42, %v79_v35 }
  0x28   :  { %s402_s17 = sld [smem:[#allocation3 + $0x19]]  ;;  %v180_v44 = vstv %s377_s8  ;;  %v446_v50 = vmax.f32 %v110_v37, 0.0  ;;  %v164_v54 = vmul.f32 %v163_v43, %v79_v35 }
  0x29   :  { %s405_s18 = sld [smem:[#allocation3 + $0x1a]]  ;;  %v116_v46 = vstv %s382_s11  ;;  %v181_v55 = vmul.f32 %v180_v44, %v79_v35 }
  0x2a   :  { %s409_s2 = sld [smem:[#allocation3 + $0x1b]]  ;;  %v133_v48 = vstv %s384_s12  ;;  %v117_v57 = vmul.f32 %v116_v46, %v87_v40 }
  0x2b   :  { %s412_s19 = sld [smem:[#allocation3 + $0x1c]]  ;;  %v150_v51 = vstv %s387_s13  ;;  %v134_v59 = vmul.f32 %v133_v48, %v87_v40 }
  0x2c   :  { %s417_s0 = sld [smem:[#allocation3 + $0x1d]]  ;;  %v167_v52 = vstv %s390_s14  ;;  %v151_v61 = vmul.f32 %v150_v51, %v87_v40  ;;  %s317_s14 = smov [#allocation4]  }
  0x2d   :  { %s419_s20 = sld [smem:[#allocation3 + $0x1e]]  ;;  %v184_v56 = vstv %s397_s1  ;;  %v168_v63 = vmul.f32 %v167_v52, %v87_v40  ;;  %s220_s15 = sshll.u32 %s317_s14, 4  ;;  %s221_s15 = int_to_ptr.vmem [resolvable:$true] %s220_s15 }
  0x2e   :  { %s421_s21 = sld [smem:[#allocation3 + $0x1f]]  ;;  %v119_v58 = vstv %s402_s17  ;;  %v185_v3 = vmul.f32 %v184_v56, %v87_v40  ;;  %s292_s16 = scalar_lea.vmem %s221_s15, 128 }
  0x2f   :  { %s423_s22 = sld [smem:[#allocation3 + $0x20]]  ;;  %v136_v60 = vstv %s405_s18  ;;  %v120_v5 = vmul.f32 %v119_v58, %v95_v41  ;;  %p293_p5 = scmp.ne.s32.totalorder %s221_s15, %s292_s16 }
  0x30   :  { %s425_s23 = sld [smem:[#allocation3 + $0x21]]  ;;  %v153_v62 = vstv %s409_s2  ;;  %v137_v6 = vmul.f32 %v136_v60, %v95_v41  ;;  %p297_p6 = scmp.lt.s32.totalorder %s221_s15, %s221_s15 }
  0x31   :  { %s427_s24 = sld [smem:[#allocation3 + $0x22]]  ;;  %v170_v0 = vstv %s412_s19  ;;  %v154_v10 = vmul.f32 %v153_v62, %v95_v41  ;;  %p298_p7 = scmp.lt.s32.totalorder %s292_s16, %s292_s16 }
  0x32   :  { %s429_s25 = sld [smem:[#allocation3 + $0x23]]  ;;  %v187_v4 = vstv %s417_s0  ;;  %v171_v11 = vmul.f32 %v170_v0, %v95_v41 }
  0x33   :  { %s433_s26 = sld [smem:[#allocation3 + $0x24]]  ;;  %v122_v1 = vstv %s419_s20  ;;  %v188_v16 = vmul.f32 %v187_v4, %v95_v41  ;;  %p299_p8 = por %p298_p7, %p297_p6 }
  0x34   :  { %s435_s27 = sld [smem:[#allocation3 + $0x25]]  ;;  %v139_v2 = vstv %s421_s21  ;;  %v123_v14 = vmul.f32 %v122_v1, %v103_v49 }
  0x35   :  { %s440_s28 = sld [smem:[#allocation3 + $0x26]]  ;;  %v156_v7 = vstv %s423_s22  ;;  %v140_v15 = vmul.f32 %v139_v2, %v103_v49  ;;  %p300_p9 = pnand %p299_p8, %p293_p5 }
  0x36   :  { %s444_s29 = sld [smem:[#allocation3 + $0x27]]  ;;  %v173_v8 = vstv %s425_s23  ;;  %v157_v19 = vmul.f32 %v156_v7, %v103_v49 }
  0x37   :  { %s450_s30 = sld [smem:[#allocation3 + $0x28]]  ;;  %v190_v12 = vstv %s427_s24  ;;  %v174_v20 = vmul.f32 %v173_v8, %v103_v49 }
  0x38   :  { %s453_s4 = sld [smem:[#allocation3 + $0x29]]  ;;  %v125_v9 = vstv %s429_s25  ;;  %v191_v24 = vmul.f32 %v190_v12, %v103_v49 }
  0x39   :  { %s457_s5 = sld [smem:[#allocation3 + $0x2a]]  ;;  %v126_v21 = vmul.f32 %v125_v9, %v446_v50  ;;  %v142_v26 = vstv %s433_s26 }
  0x3a   :  { %s461_s6 = sld [smem:[#allocation3 + $0x2b]]  ;;  %v159_v30 = vstv %s435_s27  ;;  %v143_v38 = vmul.f32 %v142_v26, %v446_v50 }
  0x3b   :  { %s466_s7 = sld [smem:[#allocation3 + $0x2c]]  ;;  %v176_v35 = vstv %s440_s28  ;;  %v160_v43 = vmul.f32 %v159_v30, %v446_v50 }
  0x3c   :  { %s473_s8 = sld [smem:[#allocation3 + $0x2d]]  ;;  %v193_v40 = vstv %s444_s29 }
  0x3d   :  { %v114_v13 = vstv %s450_s30  ;;  %s476_s9 = sld [smem:[#allocation3 + $0x2e]]  ;;  %v194_v52 = vmul.f32 %v193_v40, %v446_v50 }
  0x3e   :  { %v115_v17 = vadd.f32 %v114_v13, %v113_v45  ;;  %v131_v18 = vstv %s453_s4  ;;  %s480_s10 = sld [smem:[#allocation3 + $0x2f]] }
  0x3f   :  { %v132_v22 = vadd.f32 %v131_v18, %v130_v47  ;;  %v148_v23 = vstv %s457_s5  ;;  %s484_s11 = sld [smem:[#allocation3 + $0x32]]  ;;  %v177_v47 = vmul.f32 %v176_v35, %v446_v50 }
  0x40   :  { %v118_v25 = vadd.f32 %v117_v57, %v115_v17  ;;  %v149_v27 = vadd.f32 %v148_v23, %v147_v53  ;;  %v165_v28 = vstv %s461_s6  ;;  %s489_s12 = sld [smem:[#allocation3 + $0x30]] }
  0x41   :  { %v135_v29 = vadd.f32 %v134_v59, %v132_v22  ;;  %v166_v31 = vadd.f32 %v165_v28, %v164_v54  ;;  %v182_v32 = vstv %s466_s7  ;;  %s494_s13 = sld [smem:[#allocation3 + $0x31]] }
  0x42   :  { %v121_v33 = vadd.f32 %v120_v5, %v118_v25  ;;  %v152_v34 = vadd.f32 %v151_v61, %v149_v27  ;;  %v183_v36 = vadd.f32 %v182_v32, %v181_v55  ;;  %v197_v55 = vstv %s473_s8 }
  0x43   :  { %v138_v37 = vadd.f32 %v137_v6, %v135_v29  ;;  %v169_v39 = vadd.f32 %v168_v63, %v166_v31  ;;  %v201_v59 = vstv %s476_s9 }
  0x44   :  { %v124_v41 = vadd.f32 %v123_v14, %v121_v33  ;;  %v155_v42 = vadd.f32 %v154_v10, %v152_v34  ;;  %v186_v44 = vadd.f32 %v185_v3, %v183_v36  ;;  %v204_v63 = vstv %s480_s10 }
  0x45   :  { %v141_v45 = vadd.f32 %v140_v15, %v138_v37  ;;  %v172_v46 = vadd.f32 %v171_v11, %v169_v39  ;;  %v199_v62 = vstv %s484_s11 }
  0x46   :  { %v127_v48 = vadd.f32 %v126_v21, %v124_v41  ;;  %v158_v49 = vadd.f32 %v157_v19, %v155_v42  ;;  %v189_v51 = vadd.f32 %v188_v16, %v186_v44  ;;  %v207_v5 = vstv %s489_s12 }
  0x47   :  { %v144_v53 = vadd.f32 %v143_v38, %v141_v45  ;;  %v175_v54 = vadd.f32 %v174_v20, %v172_v46  ;;  %v210_v8 = vstv %s494_s13 }
  0x48   :  { %v128_v56 = vmax.f32 %v127_v48, 0.0  ;;  %v161_v57 = vadd.f32 %v160_v43, %v158_v49  ;;  %v192_v58 = vadd.f32 %v191_v24, %v189_v51 }
  0x49   :  { %v145_v60 = vmax.f32 %v144_v53, 0.0  ;;  %v178_v61 = vadd.f32 %v177_v47, %v175_v54 }
  0x4a   :  { %v162_v0 = vmax.f32 %v161_v57, 0.0  ;;  %v195_v1 = vadd.f32 %v194_v52, %v192_v58  ;;  %v198_v2 = vmul.f32 %v197_v55, %v128_v56 }
  0x4b   :  { %v179_v3 = vmax.f32 %v178_v61, 0.0  ;;  %v202_v4 = vmul.f32 %v201_v59, %v145_v60 }
  0x4c   :  { %v196_v50 = vmax.f32 %v195_v1, 0.0  ;;  %v200_v6 = vadd.f32 %v199_v62, %v198_v2  ;;  %v205_v7 = vmul.f32 %v204_v63, %v162_v0 }
  0x4d   :  { %v208_v10 = vmul.f32 %v207_v5, %v179_v3 }
  0x4e   :  { %v203_v9 = vadd.f32 %v202_v4, %v200_v6  ;;  %v211_v12 = vmul.f32 %v210_v8, %v196_v50 }
  0x50   :  { %v206_v11 = vadd.f32 %v205_v7, %v203_v9 }
  0x52   :  { %v209_v13 = vadd.f32 %v208_v10, %v206_v11 }
  0x54   :  { %v212_v14 = vadd.f32 %v211_v12, %v209_v13 }
  0x56   :  { %213 = vst [vmem:[#allocation4] sm:$0xff] %v212_v14 }
  0x57   :  { %303 = shalt.err (!%p300_p9)
}
  0x58   :  { %223 = dma.vmem_to_hbm [thread:$0]  %s221_s15, 128, %s510_s3, [#allocation5]  }
  0x59   :  { %314 = dma.done.wait [#allocation5], 128  }
  0x5a   :  { %315 = vsyncadd [#allocation5], 4294967168 }
  0x5b   :  { %227 = vsyncpa [#allocation5], 1 }

</bundles_post_ra>
